<compile_context>
chip_gen: v7x
topology: tpu7x:2x2x1
jax: 0.10.0
libtpu: 0.0.40
codegen_flags: <defaults>
</compile_context>

<pallas_src>
import functools

import jax
import jax.numpy as jnp
from jax.experimental import pallas as pl
from jax.experimental.pallas import tpu as pltpu


def _rnn_kernel(x_ref, wih_ref, whh_ref, b_ref, wfc_ref, bfc_ref, out_ref,
                *, T, B):
    """x_ref: (T*B, I) time-major flattened input, wih_ref: (I, H),
    whh_ref: (H, H), b_ref: (1, H) = b_ih + b_hh, wfc_ref: (H, O),
    bfc_ref: (1, O), out_ref: (B, O)."""
    # Hoisted input projection: one MXU op for all time steps.
    pre = (jnp.dot(x_ref[...], wih_ref[...],
                   preferred_element_type=jnp.float32)
           + b_ref[...])                                   # (T*B, H)

    whh = whh_ref[...]                                     # (H, H), loaded once

    # t = 0: h_prev = 0, so h = tanh(pre[0]).
    h = jnp.tanh(pre[0:B, :])

    # Fully unrolled recurrence (T is a small static trip count; static slices
    # keep everything aligned to 8-row sublane boundaries since B == 8).
    for t in range(1, T):
        h = jnp.tanh(pre[t * B:(t + 1) * B, :]
                     + jnp.dot(h, whh, preferred_element_type=jnp.float32))

    # Fused fc head on the last hidden state.
    out_ref[...] = (jnp.dot(h, wfc_ref[...],
                            preferred_element_type=jnp.float32)
                    + bfc_ref[...])


def rnn_forward(x, w_ih, w_hh, b_ih, b_hh, w_fc, b_fc):
    """x: (B, T, I) float32. Weights in PyTorch convention:
       w_ih (H, I), w_hh (H, H), b_ih (H,), b_hh (H,), w_fc (O, H), b_fc (O,)."""
    B, T, I = x.shape
    H = w_hh.shape[0]
    O = w_fc.shape[0]

    # Glue (wrapper-side layout only):
    #  - time-major + flattened x so the kernel can do one batched input matmul
    #  - pre-transposed weights for row-major matmuls
    #  - pre-summed RNN biases
    x_flat = jnp.transpose(x, (1, 0, 2)).reshape(T * B, I)   # (T*B, I)
    wih_t = jnp.transpose(w_ih)                              # (I, H)
    whh_t = jnp.transpose(w_hh)                              # (H, H)
    wfc_t = jnp.transpose(w_fc)                              # (H, O)
    b2 = (b_ih + b_hh).reshape(1, H)                         # (1, H)
    bfc2 = b_fc.reshape(1, O)                                # (1, O)

    vmem = lambda: pl.BlockSpec(memory_space=pltpu.MemorySpace.VMEM)

    kernel = functools.partial(_rnn_kernel, T=T, B=B)

    return pl.pallas_call(
        kernel,
        out_shape=jax.ShapeDtypeStruct((B, O), jnp.float32),
        in_specs=[vmem() for _ in range(6)],
        out_specs=vmem(),
    )(x_flat, wih_t, whh_t, b2, wfc_t, bfc2)


def rnn_reference(x, w_ih, w_hh, b_ih, b_hh, w_fc, b_fc):
    """Pure-JAX reference of the PyTorch forward, for validation."""
    B, T, I = x.shape
    H = w_hh.shape[0]

    def step(h, x_t):
        h_new = jnp.tanh(x_t @ w_ih.T + b_ih + h @ w_hh.T + b_hh)
        return h_new, None

    h0 = jnp.zeros((B, H), jnp.float32)
    h_last, _ = jax.lax.scan(step, h0, jnp.transpose(x, (1, 0, 2)))
    return h_last @ w_fc.T + b_fc


if __name__ == "__main__":
    # Small shapes consistent with the module's forward (B, T, I) -> (B, O).
    B, T, I, H, O = 8, 8, 16, 32, 8

    key = jax.random.PRNGKey(0)
    ks = jax.random.split(key, 8)
    bound_rnn = 1.0 / jnp.sqrt(H)
    bound_fc = 1.0 / jnp.sqrt(H)

    x = jax.random.normal(ks[0], (B, T, I), dtype=jnp.float32)
    w_ih = jax.random.uniform(ks[1], (H, I), jnp.float32, -bound_rnn, bound_rnn)
    w_hh = jax.random.uniform(ks[2], (H, H), jnp.float32, -bound_rnn, bound_rnn)
    b_ih = jax.random.uniform(ks[3], (H,), jnp.float32, -bound_rnn, bound_rnn)
    b_hh = jax.random.uniform(ks[4], (H,), jnp.float32, -bound_rnn, bound_rnn)
    w_fc = jax.random.uniform(ks[5], (O, H), jnp.float32, -bound_fc, bound_fc)
    b_fc = jax.random.uniform(ks[6], (O,), jnp.float32, -bound_fc, bound_fc)

    out = rnn_forward(x, w_ih, w_hh, b_ih, b_hh, w_fc, b_fc)
    out = jax.block_until_ready(out)

    ref = rnn_reference(x, w_ih, w_hh, b_ih, b_hh, w_fc, b_fc)
    assert out.shape == (B, O)
    assert jnp.allclose(out, ref, atol=1e-5, rtol=1e-5), "mismatch vs reference"

    print("KERNEL_OK")
</pallas_src>

<mosaic_0001>
module attributes {stable_mosaic.version = 11 : i64} {
  func.func @_rnn_kernel(%arg0: memref<64x16xf32, #tpu.memory_space<vmem>>, %arg1: memref<16x32xf32, #tpu.memory_space<vmem>>, %arg2: memref<32x32xf32, #tpu.memory_space<vmem>>, %arg3: memref<1x32xf32, #tpu.memory_space<vmem>>, %arg4: memref<32x8xf32, #tpu.memory_space<vmem>>, %arg5: memref<1x8xf32, #tpu.memory_space<vmem>>, %arg6: memref<8x8xf32, #tpu.memory_space<vmem>>) attributes {dimension_semantics = [], scalar_prefetch = 0 : i64, scratch_operands = 0 : i64, tpu.core_type = #tpu.core_type<tc>} {
    %c0 = arith.constant 0 : index
    %c0_0 = arith.constant 0 : index
    %0 = vector.load %arg0[%c0, %c0_0] : memref<64x16xf32, #tpu.memory_space<vmem>>, vector<64x16xf32>
    %c0_1 = arith.constant 0 : index
    %c0_2 = arith.constant 0 : index
    %1 = vector.load %arg1[%c0_1, %c0_2] : memref<16x32xf32, #tpu.memory_space<vmem>>, vector<16x32xf32>
    %cst = arith.constant dense<0.000000e+00> : vector<64x32xf32>
    %2 = tpu.matmul %0, %1, %cst {dimension_numbers = #tpu.dot_dimension_numbers<[1], [0], [0], [1], [0, 0, 1, 1], [], []>} : vector<64x16xf32>, vector<16x32xf32>, vector<64x32xf32> -> vector<64x32xf32>
    %c0_3 = arith.constant 0 : index
    %c0_4 = arith.constant 0 : index
    %3 = vector.load %arg3[%c0_3, %c0_4] : memref<1x32xf32, #tpu.memory_space<vmem>>, vector<1x32xf32>
    %4 = vector.broadcast %3 : vector<1x32xf32> to vector<64x32xf32>
    %5 = arith.addf %2, %4 : vector<64x32xf32>
    %c0_5 = arith.constant 0 : index
    %c0_6 = arith.constant 0 : index
    %6 = vector.load %arg2[%c0_5, %c0_6] : memref<32x32xf32, #tpu.memory_space<vmem>>, vector<32x32xf32>
    %7 = vector.extract_strided_slice %5 {offsets = [0, 0], sizes = [8, 32], strides = [1, 1]} : vector<64x32xf32> to vector<8x32xf32>
    %8 = math.tanh %7 : vector<8x32xf32>
    %9 = vector.extract_strided_slice %5 {offsets = [8, 0], sizes = [8, 32], strides = [1, 1]} : vector<64x32xf32> to vector<8x32xf32>
    %cst_7 = arith.constant dense<0.000000e+00> : vector<8x32xf32>
    %10 = tpu.matmul %8, %6, %cst_7 {dimension_numbers = #tpu.dot_dimension_numbers<[1], [0], [0], [1], [0, 0, 1, 1], [], []>} : vector<8x32xf32>, vector<32x32xf32>, vector<8x32xf32> -> vector<8x32xf32>
    %11 = arith.addf %9, %10 : vector<8x32xf32>
    %12 = math.tanh %11 : vector<8x32xf32>
    %13 = vector.extract_strided_slice %5 {offsets = [16, 0], sizes = [8, 32], strides = [1, 1]} : vector<64x32xf32> to vector<8x32xf32>
    %cst_8 = arith.constant dense<0.000000e+00> : vector<8x32xf32>
    %14 = tpu.matmul %12, %6, %cst_8 {dimension_numbers = #tpu.dot_dimension_numbers<[1], [0], [0], [1], [0, 0, 1, 1], [], []>} : vector<8x32xf32>, vector<32x32xf32>, vector<8x32xf32> -> vector<8x32xf32>
    %15 = arith.addf %13, %14 : vector<8x32xf32>
    %16 = math.tanh %15 : vector<8x32xf32>
    %17 = vector.extract_strided_slice %5 {offsets = [24, 0], sizes = [8, 32], strides = [1, 1]} : vector<64x32xf32> to vector<8x32xf32>
    %cst_9 = arith.constant dense<0.000000e+00> : vector<8x32xf32>
    %18 = tpu.matmul %16, %6, %cst_9 {dimension_numbers = #tpu.dot_dimension_numbers<[1], [0], [0], [1], [0, 0, 1, 1], [], []>} : vector<8x32xf32>, vector<32x32xf32>, vector<8x32xf32> -> vector<8x32xf32>
    %19 = arith.addf %17, %18 : vector<8x32xf32>
    %20 = math.tanh %19 : vector<8x32xf32>
    %21 = vector.extract_strided_slice %5 {offsets = [32, 0], sizes = [8, 32], strides = [1, 1]} : vector<64x32xf32> to vector<8x32xf32>
    %cst_10 = arith.constant dense<0.000000e+00> : vector<8x32xf32>
    %22 = tpu.matmul %20, %6, %cst_10 {dimension_numbers = #tpu.dot_dimension_numbers<[1], [0], [0], [1], [0, 0, 1, 1], [], []>} : vector<8x32xf32>, vector<32x32xf32>, vector<8x32xf32> -> vector<8x32xf32>
    %23 = arith.addf %21, %22 : vector<8x32xf32>
    %24 = math.tanh %23 : vector<8x32xf32>
    %25 = vector.extract_strided_slice %5 {offsets = [40, 0], sizes = [8, 32], strides = [1, 1]} : vector<64x32xf32> to vector<8x32xf32>
    %cst_11 = arith.constant dense<0.000000e+00> : vector<8x32xf32>
    %26 = tpu.matmul %24, %6, %cst_11 {dimension_numbers = #tpu.dot_dimension_numbers<[1], [0], [0], [1], [0, 0, 1, 1], [], []>} : vector<8x32xf32>, vector<32x32xf32>, vector<8x32xf32> -> vector<8x32xf32>
    %27 = arith.addf %25, %26 : vector<8x32xf32>
    %28 = math.tanh %27 : vector<8x32xf32>
    %29 = vector.extract_strided_slice %5 {offsets = [48, 0], sizes = [8, 32], strides = [1, 1]} : vector<64x32xf32> to vector<8x32xf32>
    %cst_12 = arith.constant dense<0.000000e+00> : vector<8x32xf32>
    %30 = tpu.matmul %28, %6, %cst_12 {dimension_numbers = #tpu.dot_dimension_numbers<[1], [0], [0], [1], [0, 0, 1, 1], [], []>} : vector<8x32xf32>, vector<32x32xf32>, vector<8x32xf32> -> vector<8x32xf32>
    %31 = arith.addf %29, %30 : vector<8x32xf32>
    %32 = math.tanh %31 : vector<8x32xf32>
    %33 = vector.extract_strided_slice %5 {offsets = [56, 0], sizes = [8, 32], strides = [1, 1]} : vector<64x32xf32> to vector<8x32xf32>
    %cst_13 = arith.constant dense<0.000000e+00> : vector<8x32xf32>
    %34 = tpu.matmul %32, %6, %cst_13 {dimension_numbers = #tpu.dot_dimension_numbers<[1], [0], [0], [1], [0, 0, 1, 1], [], []>} : vector<8x32xf32>, vector<32x32xf32>, vector<8x32xf32> -> vector<8x32xf32>
    %35 = arith.addf %33, %34 : vector<8x32xf32>
    %36 = math.tanh %35 : vector<8x32xf32>
    %c0_14 = arith.constant 0 : index
    %c0_15 = arith.constant 0 : index
    %37 = vector.load %arg4[%c0_14, %c0_15] : memref<32x8xf32, #tpu.memory_space<vmem>>, vector<32x8xf32>
    %cst_16 = arith.constant dense<0.000000e+00> : vector<8x8xf32>
    %38 = tpu.matmul %36, %37, %cst_16 {dimension_numbers = #tpu.dot_dimension_numbers<[1], [0], [0], [1], [0, 0, 1, 1], [], []>} : vector<8x32xf32>, vector<32x8xf32>, vector<8x8xf32> -> vector<8x8xf32>
    %c0_17 = arith.constant 0 : index
    %c0_18 = arith.constant 0 : index
    %39 = vector.load %arg5[%c0_17, %c0_18] : memref<1x8xf32, #tpu.memory_space<vmem>>, vector<1x8xf32>
    %40 = vector.broadcast %39 : vector<1x8xf32> to vector<8x8xf32>
    %41 = arith.addf %38, %40 : vector<8x8xf32>
    %c0_19 = arith.constant 0 : index
    %c0_20 = arith.constant 0 : index
    %42 = vector.load %arg6[%c0_19, %c0_20] : memref<8x8xf32, #tpu.memory_space<vmem>>, vector<8x8xf32>
    tpu.vector_store %arg6[%c0_19, %c0_20], %41 {strides = array<i32>} : memref<8x8xf32, #tpu.memory_space<vmem>>, vector<8x8xf32>,
    return
  }
}

</mosaic_0001>

<bundles_post_ra>
// kernel: tpu_custom_call.1
= control target key start
LH: loop header
LB: loop body
LE: loop exit
PB: predicated region body
PF: predicated region fallthrough
CT: control target
= control target key end

     0   :  { %vm41_vm0 = vcmask 130048   ;;  %s1257_s0 = inlined_call_operand.vmem [shape: f32[64,16], index: 0, kind: input, shape index: {}]   ;;  %s1258_s1 = inlined_call_operand.vmem [shape: f32[16,32], index: 1, kind: input, shape index: {}]   ;;  %s1259_s2 = inlined_call_operand.vmem [shape: f32[32,32], index: 2, kind: input, shape index: {}]   ;;  %s1260_s3 = inlined_call_operand.vmem [shape: f32[1,32], index: 3, kind: input, shape index: {}]   ;;  %s1261_s4 = inlined_call_operand.vmem [shape: f32[32,8], index: 4, kind: input, shape index: {}]   ;;  %s1262_s5 = inlined_call_operand.vmem [shape: f32[1,8], index: 5, kind: input, shape index: {}]   ;;  %s1263_s6 = inlined_call_operand.hbm [shape: f32[8,8], index: 6, kind: output, shape index: {}]  }
   0x1   :  { %v32_v0 = vld [vmem:[%s1258_s1] sm:$0xff]  ;;  %v33_v1 = vld [vmem:[%s1258_s1 + $0x8] sm:$0xff] }
   0x2   :  { %v24_v2 = vld [vmem:[%s1257_s0] sm:$0xff]  ;;  %v974_v3 = vpack.c.bf16 %v33_v1, %v32_v0 }
   0x3   :  { %874 = vmatprep.mubr.msk.f32.mxu0 %vm41_vm0, %v24_v2 }
   0x4   :  { %11 = vsyncpa [#allocation3], 0  ;;  %975 = vmatprep.subr.bf16.mxu0 %v974_v3  ;;  %v25_v4 = vld [vmem:[%s1257_s0 + $0x8] sm:$0xff]  ;;  %v171_v5 = vld [vmem:[%s1259_s2] sm:$0xff]  ;;  %v1070_v8 = vmov 0.0|0.0   ;;  %vm1071_vm1 = vmmov 0  }
   0x5   :  { %977 = vmatpush3.bf16.msra.mxu0 %v974_v3  ;;  %v172_v6 = vld [vmem:[%s1259_s2 + $0x8] sm:$0xff]  ;;  %v173_v7 = vld [vmem:[%s1259_s2 + $0x10] sm:$0xff]  ;;  %978 = vmatprep.subr.bf16.mxu1 %v1070_v8  ;;  %v174_v10 = vld [vmem:[%s1259_s2 + $0x18] sm:$0xff]  ;;  %v1072_v11 = vmov 0.0   ;;  %vm176_vm2 = vcmask 261120   ;;  %s1073_s8 = smov [#allocation2]  }
   0x6   :  { %v1133_v9 = vpack.c.bf16 %v172_v6, %v171_v5  ;;  %894 = vmatprep.mubr.msk.f32.mxu1 %vm1071_vm1, %v1072_v11  ;;  %990 = vmatprep.subr.bf16.mxu0 %v1070_v8  ;;  %v1142_v12 = vpack.c.bf16 %v174_v10, %v173_v7  ;;  %v1154_v13 = vld [vmem:[%s1260_s3] ss:$0 sm:$0xff]  ;;  %v26_v18 = vld [vmem:[%s1257_s0 + $0x10] sm:$0xff]  ;;  %v27_v19 = vld [vmem:[%s1257_s0 + $0x18] sm:$0xff]  ;;  %vm786_vm3 = vcmask 64512  }
   0x7   :  { %v28_v27 = vld [vmem:[%s1257_s0 + $0x20] sm:$0xff]  ;;  %v29_v28 = vld [vmem:[%s1257_s0 + $0x28] sm:$0xff]  ;;  %v30_v29 = vld [vmem:[%s1257_s0 + $0x30] sm:$0xff] }
   0x8   :  { %875 = vmatmul.mubr.msk.f32.vlgmr.msra.gmra.mrb[0].mxu0 %vm41_vm0, %v25_v4  ;;  %980 = vmatpush3.bf16.msra.mxu1 %v1133_v9  ;;  %v31_v30 = vld [vmem:[%s1257_s0 + $0x38] sm:$0xff]  ;;  %v702_v60 = vld [vmem:[%s1261_s4] sm:$0xff]  ;;  %v703_v61 = vld [vmem:[%s1261_s4 + $0x8] sm:$0xff] }
   0x9   :  { %992 = vmatpush3.bf16.msra.mxu0 %v1133_v9  ;;  %981 = vmatprep.subr.bf16.mxu1 %v1070_v8  ;;  %v704_v62 = vld [vmem:[%s1261_s4 + $0x10] sm:$0xff]  ;;  %v1021_v63 = vpack.c.bf16 %v703_v61, %v702_v60  ;;  %v705_v0 = vld [vmem:[%s1261_s4 + $0x18] sm:$0xff]  ;;  %v818_v7 = vld [vmem:[%s1262_s5] ss:$0 sm:$0xff]  ;;  %s794_s4 = sshll.u32 %s1073_s8, 4  ;;  %s795_s4 = int_to_ptr.vmem [resolvable:$true] %s794_s4 }
   0xa   :  { %993 = vmatprep.subr.bf16.mxu0 %v1070_v8  ;;  %877 = vmatprep.mubr.msk.f32.mxu0 %vm41_vm0, %v26_v18  ;;  %v1024_v1 = vpack.c.bf16 %v705_v0, %v704_v62  ;;  %s1046_s9 = scalar_lea.vmem %s795_s4, 128  ;;  %p1051_p1 = scmp.lt.s32.totalorder %s795_s4, %s795_s4 }
   0xb   :  { %p1047_p0 = scmp.ne.s32.totalorder %s795_s4, %s1046_s9  ;;  %p1052_p2 = scmp.lt.s32.totalorder %s1046_s9, %s1046_s9 }
   0xc   :  { %983 = vmatpush3.bf16.msra.mxu1 %v1142_v12  ;;  %878 = vmatmul.mubr.msk.f32.gmra.mrb[2].mxu0 %vm41_vm0, %v27_v19 }
   0xd   :  { %995 = vmatpush3.bf16.msra.mxu0 %v1142_v12  ;;  %984 = vmatprep.subr.bf16.mxu1 %v1070_v8  ;;  %p1053_p3 = por %p1052_p2, %p1051_p1 }
   0xe   :  { %1002 = vmatprep.subr.bf16.mxu0 %v1070_v8  ;;  %880 = vmatprep.mubr.msk.f32.mxu0 %vm41_vm0, %v28_v27 }
   0xf   :  { %p1054_p4 = pnand %p1053_p3, %p1047_p0 }
  0x10   :  { %881 = vmatmul.mubr.msk.f32.gmra.mrb[4].mxu0 %vm41_vm0, %v29_v28 }
  0x11   :  { %883 = vmatprep.mubr.msk.f32.mxu0 %vm41_vm0, %v30_v29 }
  0x14   :  { %884 = vmatmul.mubr.msk.f32.gmra.mrb[6].mxu0 %vm41_vm0, %v31_v30 }
  0x15   :  { %916 = vmatprep.mubr.msk.f32.mxu0 %vm1071_vm1, %v1072_v11 }
  0xdb   :  { %v876_v14 = vpop.f32.mrb[0].mxu0 }
  0xdc   :  { %v132_v15 = vpop.f32.mrb[1].mxu0  ;;  %v138_v20 = vadd.f32 %v876_v14, %v1154_v13 }
  0xdd   :  { %v133_v16 = vadd.f32 %v1154_v13, %v132_v15 }
  0xdf   :  { %1030 = vtanh.f32 %v133_v16  ;;  %v879_v25 = vpop.f32.mrb[2].mxu0 }
  0xe0   :  { %v142_v26 = vpop.f32.mrb[3].mxu0  ;;  %v148_v40 = vadd.f32 %v879_v25, %v1154_v13 }
  0xe1   :  { %v143_v31 = vadd.f32 %v1154_v13, %v142_v26 }
  0xe3   :  { %v882_v36 = vpop.f32.mrb[4].mxu0 }
  0xe4   :  { %v152_v37 = vpop.f32.mrb[5].mxu0  ;;  %v158_v50 = vadd.f32 %v882_v36, %v1154_v13 }
  0xe5   :  { %v153_v45 = vadd.f32 %v1154_v13, %v152_v37 }
  0xe7   :  { %v885_v38 = vpop.f32.mrb[6].mxu0 }
  0xe8   :  { %v162_v39 = vpop.f32.mrb[7].mxu0  ;;  %v168_v2 = vadd.f32 %v885_v38, %v1154_v13 }
  0xe9   :  { %v1031_v17 = vpop.eup %1030  ;;  %v163_v55 = vadd.f32 %v1154_v13, %v162_v39 }
  0xea   :  { %895 = vmatmul.mubr.msk.f32.vlgmr.msra.gmra.mrb[0].mxu1 %vm176_vm2, %v1031_v17 }
  0xeb   :  { %986 = vmatpush3.bf16.msra.mxu1 %v1133_v9  ;;  %905 = vmatprep.mubr.msk.f32.mxu1 %vm1071_vm1, %v1072_v11 }
  0xec   :  { %987 = vmatprep.subr.bf16.mxu1 %v1070_v8 }
  0xef   :  { %989 = vmatpush3.bf16.msra.mxu1 %v1142_v12 }
  0xf0   :  { %996 = vmatprep.subr.bf16.mxu1 %v1070_v8 }
 0x1bd   :  { %v246_v21 = vpop.f32.mrb[0].mxu1 }
 0x1be   :  { %v250_v22 = vadd.f32 %v246_v21, %v138_v20  ;;  %v896_v23 = vpop.f32.mrb[1].mxu1 }
 0x1c0   :  { %1032 = vtanh.f32 %v250_v22 }
 0x1ca   :  { %v1033_v24 = vpop.eup %1032 }
 0x1cb   :  { %906 = vmatmul.mubr.msk.f32.vlgmr.msra.gmra.mrb[2].mxu1 %vm176_vm2, %v1033_v24 }
 0x1cc   :  { %998 = vmatpush3.bf16.msra.mxu1 %v1133_v9  ;;  %927 = vmatprep.mubr.msk.f32.mxu1 %vm1071_vm1, %v1072_v11 }
 0x1cd   :  { %999 = vmatprep.subr.bf16.mxu1 %v1070_v8 }
 0x1d0   :  { %1001 = vmatpush3.bf16.msra.mxu1 %v1142_v12 }
 0x1d1   :  { %1008 = vmatprep.subr.bf16.mxu1 %v1070_v8 }
 0x29e   :  { %v321_v32 = vpop.f32.mrb[2].mxu1 }
 0x29f   :  { %v325_v33 = vadd.f32 %v321_v32, %v143_v31  ;;  %v907_v34 = vpop.f32.mrb[3].mxu1 }
 0x2a1   :  { %1034 = vtanh.f32 %v325_v33 }
 0x2ab   :  { %v1035_v35 = vpop.eup %1034 }
 0x2ac   :  { %917 = vmatmul.mubr.msk.f32.vlgmr.msra.gmra.mrb[8].mxu0 %vm176_vm2, %v1035_v35 }
 0x2ad   :  { %1004 = vmatpush3.bf16.msra.mxu0 %v1133_v9  ;;  %938 = vmatprep.mubr.msk.f32.mxu0 %vm1071_vm1, %v1072_v11 }
 0x2ae   :  { %1005 = vmatprep.subr.bf16.mxu0 %v1070_v8 }
 0x2b1   :  { %1007 = vmatpush3.bf16.msra.mxu0 %v1142_v12 }
 0x2b2   :  { %1014 = vmatprep.subr.bf16.mxu0 %v1070_v8 }
 0x37f   :  { %v396_v41 = vpop.f32.mrb[8].mxu0 }
 0x380   :  { %v400_v42 = vadd.f32 %v396_v41, %v148_v40  ;;  %v918_v43 = vpop.f32.mrb[9].mxu0 }
 0x382   :  { %1036 = vtanh.f32 %v400_v42 }
 0x38c   :  { %v1037_v44 = vpop.eup %1036 }
 0x38d   :  { %928 = vmatmul.mubr.msk.f32.vlgmr.msra.gmra.mrb[4].mxu1 %vm176_vm2, %v1037_v44 }
 0x38e   :  { %1010 = vmatpush3.bf16.msra.mxu1 %v1133_v9  ;;  %949 = vmatprep.mubr.msk.f32.mxu1 %vm1071_vm1, %v1072_v11 }
 0x38f   :  { %1011 = vmatprep.subr.bf16.mxu1 %v1070_v8 }
 0x392   :  { %1013 = vmatpush3.bf16.msra.mxu1 %v1142_v12 }
 0x393   :  { %1020 = vmatprep.subr.bf16.mxu1 %v1070_v8 }
 0x460   :  { %v471_v46 = vpop.f32.mrb[4].mxu1 }
 0x461   :  { %v475_v47 = vadd.f32 %v471_v46, %v153_v45  ;;  %v929_v48 = vpop.f32.mrb[5].mxu1 }
 0x463   :  { %1038 = vtanh.f32 %v475_v47 }
 0x46d   :  { %v1039_v49 = vpop.eup %1038 }
 0x46e   :  { %939 = vmatmul.mubr.msk.f32.vlgmr.msra.gmra.mrb[10].mxu0 %vm176_vm2, %v1039_v49 }
 0x46f   :  { %1016 = vmatpush3.bf16.msra.mxu0 %v1133_v9  ;;  %960 = vmatprep.mubr.msk.f32.mxu0 %vm1071_vm1, %v1072_v11 }
 0x470   :  { %1017 = vmatprep.subr.bf16.mxu0 %v1070_v8 }
 0x473   :  { %1019 = vmatpush3.bf16.msra.mxu0 %v1142_v12 }
 0x541   :  { %v546_v51 = vpop.f32.mrb[10].mxu0 }
 0x542   :  { %v550_v52 = vadd.f32 %v546_v51, %v158_v50  ;;  %v940_v53 = vpop.f32.mrb[11].mxu0 }
 0x544   :  { %1040 = vtanh.f32 %v550_v52 }
 0x54e   :  { %v1041_v54 = vpop.eup %1040 }
 0x54f   :  { %950 = vmatmul.mubr.msk.f32.vlgmr.msra.gmra.mrb[6].mxu1 %vm176_vm2, %v1041_v54 }
 0x550   :  { %971 = vmatprep.mubr.msk.f32.mxu1 %vm1071_vm1, %v1072_v11  ;;  %1022 = vmatpush3.bf16.msra.mxu1 %v1021_v63 }
 0x551   :  { %1023 = vmatprep.subr.bf16.mxu1 %v1070_v8 }
 0x554   :  { %1025 = vmatpush3.bf16.msra.mxu1 %v1024_v1 }
 0x622   :  { %v621_v56 = vpop.f32.mrb[6].mxu1 }
 0x623   :  { %v625_v57 = vadd.f32 %v621_v56, %v163_v55  ;;  %v951_v58 = vpop.f32.mrb[7].mxu1 }
 0x625   :  { %1042 = vtanh.f32 %v625_v57 }
 0x62f   :  { %v1043_v59 = vpop.eup %1042 }
 0x630   :  { %961 = vmatmul.mubr.msk.f32.vlgmr.msra.gmra.mrb[12].mxu0 %vm176_vm2, %v1043_v59 }
 0x703   :  { %v696_v3 = vpop.f32.mrb[12].mxu0 }
 0x704   :  { %v700_v4 = vadd.f32 %v696_v3, %v168_v2  ;;  %v962_v5 = vpop.f32.mrb[13].mxu0 }
 0x706   :  { %1044 = vtanh.f32 %v700_v4 }
 0x710   :  { %v1045_v6 = vpop.eup %1044 }
 0x711   :  { %972 = vmatmul.mubr.msk.f32.vlgmr.msra.gmra.mrb[8].mxu1 %vm176_vm2, %v1045_v6 }
 0x7e4   :  { %v782_v9 = vpop.f32.mrb[8].mxu1 }
 0x7e5   :  { %v783_v10 = vadd.f32 %v818_v7, %v782_v9  ;;  %v973_v8 = vpop.f32.mrb[9].mxu1 }
 0x7e7   :  { %787 = vst.msk [vmem:[#allocation2] sm:$0xff] %vm786_vm3, %v783_v10 }
 0x7e8   :  { %1057 = shalt.err (!%p1054_p4)
}
 0x7e9   :  { %s1058_s2 = scalar_lea.hbm %s1263_s6, 128 }
 0x7ea   :  { %p1059_p5 = scmp.ne.s32.totalorder %s1263_s6, %s1058_s2  ;;  %p1062_p6 = scmp.lt.u32.totalorder %s1058_s2, %s1263_s6 }
 0x7ec   :  { %p1064_p7 = pnand %p1062_p6, %p1059_p5 }
 0x7ee   :  { %1067 = shalt.err (!%p1064_p7)
}
 0x7ef   :  { %797 = dma.vmem_to_hbm [thread:$0]  %s795_s4, 128, %s1263_s6, [#allocation3]  }
 0x7f0   :  { %1068 = dma.done.wait [#allocation3], 128  }
 0x7f1   :  { %1069 = vsyncadd [#allocation3], 4294967168 }
 0x7f2   :  { %801 = vsyncpa [#allocation3], 1 }

</bundles_post_ra>
